<compile_context>
chip_gen: v6e
topology: v6e:2x2x1
jax: 0.10.0
libtpu: 0.0.40
codegen_flags: <defaults>
</compile_context>

<pallas_src>
import math
import functools

import jax
import jax.numpy as jnp
from jax.experimental import pallas as pl
from jax.experimental.pallas import tpu as pltpu

NUM_CLASSES = [5, 3, 2, 3, 3, 3, 3, 2]
TOT_CLASSES = sum(NUM_CLASSES)
LANE = 128
TOT_PAD = ((TOT_CLASSES + LANE - 1) // LANE) * LANE    # lane-dense logits width

# Order in which the fused / prepared parameters are passed to pallas_call.
_W_ORDER = ("w_in_t", "b_in", "w_out_t", "b_out",
            "w1_t", "b1", "w2_t", "b2",
            "g1", "be1", "g2", "be2",
            "w_proto_t", "b_proto")


# ----------------------------------------------------------------------------
# Shared block math (traced INTO the Pallas kernel; also the pure-JAX
# reference).  Mirrors nn.TransformerEncoderLayer (post-norm, ReLU, eval-mode
# dropout = identity) + optional F.normalize + fused prototype heads.
# ----------------------------------------------------------------------------
def _layer_norm(x, gamma, beta, eps=1e-5):
    mean = jnp.mean(x, axis=-1, keepdims=True)
    var = jnp.mean((x - mean) ** 2, axis=-1, keepdims=True)
    return (x - mean) * jax.lax.rsqrt(var + eps) * gamma + beta


def _encoder_and_heads(x_flat, bn, seq, p, *, n_heads, l2_norm, recip):
    """x_flat: (bn*seq, E) f32.  Returns fused logits (bn*seq, TOT_PAD) f32.

    Matmul feeds are bf16 with f32 accumulation.  The 1/sqrt(Dh) attention
    scale is already folded into the q rows of w_in_t / b_in.
    """
    M, E = x_flat.shape
    H = n_heads
    Dh = E // H

    xb = x_flat.astype(jnp.bfloat16)

    # -- in-projection: one (M, E) @ (E, 3E) matmul over the whole block --
    qkv = jnp.dot(xb, p["w_in_t"], preferred_element_type=jnp.float32) + p["b_in"]
    q, k, v = qkv[:, :E], qkv[:, E:2 * E], qkv[:, 2 * E:]

    def split_heads(t):
        # (M, E) -> (bn*H, seq, Dh): batched-head layout for one einsum.
        t = t.reshape(bn, seq, H, Dh)
        t = jnp.swapaxes(t, 1, 2)                       # (bn, H, seq, Dh)
        return t.reshape(bn * H, seq, Dh).astype(jnp.bfloat16)

    qh, kh, vh = split_heads(q), split_heads(k), split_heads(v)

    # -- batched-head attention (no per-head Python loop / lane concat) --
    scores = jnp.einsum("bqd,bkd->bqk", qh, kh,
                        preferred_element_type=jnp.float32)      # (bn*H, S, S)
    scores = scores - jnp.max(scores, axis=-1, keepdims=True)
    probs = jnp.exp(scores)
    probs = probs * recip(jnp.sum(probs, axis=-1, keepdims=True))
    ctx = jnp.einsum("bqk,bkd->bqd", probs.astype(jnp.bfloat16), vh,
                     preferred_element_type=jnp.float32)         # (bn*H, S, Dh)
    ctx = jnp.swapaxes(ctx.reshape(bn, H, seq, Dh), 1, 2).reshape(M, E)

    attn = jnp.dot(ctx.astype(jnp.bfloat16), p["w_out_t"],
                   preferred_element_type=jnp.float32) + p["b_out"]

    # -- post-norm encoder layer.  TODO(synk): dropout = identity (inference).
    x1 = _layer_norm(x_flat + attn, p["g1"], p["be1"])
    h1 = jnp.maximum(
        jnp.dot(x1.astype(jnp.bfloat16), p["w1_t"],
                preferred_element_type=jnp.float32) + p["b1"], 0.0)
    ffn = jnp.dot(h1.astype(jnp.bfloat16), p["w2_t"],
                  preferred_element_type=jnp.float32) + p["b2"]
    x2 = _layer_norm(x1 + ffn, p["g2"], p["be2"])

    # -- optional L2 normalization (F.normalize, p=2, dim=-1, eps=1e-12) --
    if l2_norm:
        ss = jnp.sum(x2 * x2, axis=-1, keepdims=True)
        x2 = x2 * jax.lax.rsqrt(jnp.maximum(ss, 1e-24))   # 1/max(||x||, 1e-12)

    # -- all 8 prototype heads fused into one lane-dense (E -> 128) matmul --
    logits = jnp.dot(x2.astype(jnp.bfloat16), p["w_proto_t"],
                     preferred_element_type=jnp.float32) + p["b_proto"]
    return logits


# ----------------------------------------------------------------------------
# Pallas kernel: one grid step == one batch block of BN examples.
# ----------------------------------------------------------------------------
def mlc_sa_kernel(x_ref,
                  w_in_ref, b_in_ref, w_out_ref, b_out_ref,
                  w1_ref, b1_ref, w2_ref, b2_ref,
                  g1_ref, be1_ref, g2_ref, be2_ref,
                  w_proto_ref, b_proto_ref,
                  logits_ref,
                  *, n_heads, l2_norm):
    BN, S, E = x_ref.shape
    p = dict(
        w_in_t=w_in_ref[...], b_in=b_in_ref[...],
        w_out_t=w_out_ref[...], b_out=b_out_ref[...],
        w1_t=w1_ref[...], b1=b1_ref[...],
        w2_t=w2_ref[...], b2=b2_ref[...],
        g1=g1_ref[...], be1=be1_ref[...],
        g2=g2_ref[...], be2=be2_ref[...],
        w_proto_t=w_proto_ref[...], b_proto=b_proto_ref[...],
    )
    x = x_ref[...].astype(jnp.float32).reshape(BN * S, E)
    logits = _encoder_and_heads(
        x, BN, S, p, n_heads=n_heads, l2_norm=l2_norm,
        recip=lambda d: pl.reciprocal(d, approx=True))
    logits_ref[...] = logits.reshape(BN, S, TOT_PAD).astype(logits_ref.dtype)


def mlc_sa_pallas(proj_nse, fused, *, n_heads, l2_norm, max_block_n=256):
    """proj_nse: (N, S, E) f32.  Returns lane-padded logits (N, S, TOT_PAD)."""
    N, S, E = proj_nse.shape

    # Batch-block the grid; keep >= 2 "parallel" steps so both v7x TCs get
    # work (free on v5e / v6e which have a single TensorCore).
    num_blocks = max(1, pl.cdiv(N, max_block_n))
    if N >= 2:
        num_blocks = max(num_blocks, 2)
    BN = pl.cdiv(N, num_blocks)
    N_pad = BN * num_blocks
    if N_pad != N:
        proj_nse = jnp.pad(proj_nse, ((0, N_pad - N), (0, 0), (0, 0)))

    def const2d(a):
        # Weights: full array, same block every step -> fetched once, resident.
        return pl.BlockSpec(a.shape, lambda n: (0, 0))

    kernel = functools.partial(mlc_sa_kernel, n_heads=n_heads, l2_norm=l2_norm)
    logits = pl.pallas_call(
        kernel,
        out_shape=jax.ShapeDtypeStruct((N_pad, S, TOT_PAD), jnp.float32),
        grid=(num_blocks,),
        in_specs=[pl.BlockSpec((BN, S, E), lambda n: (n, 0, 0))]
                 + [const2d(fused[k]) for k in _W_ORDER],
        out_specs=pl.BlockSpec((BN, S, TOT_PAD), lambda n: (n, 0, 0)),
        compiler_params=pltpu.CompilerParams(
            dimension_semantics=("parallel",)),
    )(proj_nse, *[fused[k] for k in _W_ORDER])
    return logits[:N]


# ----------------------------------------------------------------------------
# One-time parameter preparation (weight transforms done once, not per call):
# fold 1/sqrt(Dh) into the q rows of w_in / b_in, transpose weights to
# (in, out), cast matmul operands to bf16, pad prototypes to 128 lanes.
# ----------------------------------------------------------------------------
def prepare_fused_params(params, *, n_heads):
    E = params["w_out"].shape[0]
    Dh = E // n_heads
    scale = 1.0 / math.sqrt(Dh)
    qscale = jnp.concatenate([jnp.full((E,), scale, jnp.float32),
                              jnp.ones((2 * E,), jnp.float32)])
    w_in = params["w_in"] * qscale[:, None]          # (3E, E)
    b_in = params["b_in"] * qscale[None, :]          # (1, 3E)

    pad = TOT_PAD - TOT_CLASSES
    w_proto = jnp.pad(params["w_proto"], ((0, 0), (0, pad)))
    b_proto = jnp.pad(params["b_proto"], ((0, 0), (0, pad)))

    bf = lambda w: w.astype(jnp.bfloat16)
    return dict(
        w_in_t=bf(w_in.T), b_in=b_in,
        w_out_t=bf(params["w_out"].T), b_out=params["b_out"],
        w1_t=bf(params["w1"].T), b1=params["b1"],
        w2_t=bf(params["w2"].T), b2=params["b2"],
        g1=params["g1"], be1=params["be1"],
        g2=params["g2"], be2=params["be2"],
        w_proto_t=bf(w_proto), b_proto=b_proto,
    )


# ----------------------------------------------------------------------------
# Full model forward (extractor / projectors are plain-JAX stand-ins for the
# external modules that the PyTorch Model receives via __init__).
# ----------------------------------------------------------------------------
def model_forward(derm_imgs, clinic_imgs, projectors, fused,
                  *, n_heads, l2_norm, use_pallas=True):
    # extractor stand-in: global average pool each NCHW modality -> (N, C) each
    derm_feat = jnp.mean(derm_imgs, axis=(2, 3))
    clinic_feat = jnp.mean(clinic_imgs, axis=(2, 3))
    feats = jnp.concatenate([derm_feat, clinic_feat], axis=1)          # (N, 2C)

    # projectors stand-in: list of linear projections -> (N, S, E)
    proj_list = [feats @ w + b for (w, b) in projectors]
    proj_nse = jnp.stack(proj_list, axis=1)                            # (N, S, E)
    N, S, E = proj_nse.shape

    if use_pallas:
        logits = mlc_sa_pallas(proj_nse, fused, n_heads=n_heads, l2_norm=l2_norm)
    else:
        flat = _encoder_and_heads(
            proj_nse.reshape(N * S, E).astype(jnp.float32), N, S, fused,
            n_heads=n_heads, l2_norm=l2_norm, recip=lambda d: 1.0 / d)
        logits = flat.reshape(N, S, TOT_PAD)

    logits = logits[:, :, :TOT_CLASSES]
    # un-fuse the prototype heads: preds[i] = prototypes[i](sa_feats[i % S])
    preds, off = [], 0
    for i, nc in enumerate(NUM_CLASSES):
        preds.append(logits[:, i % S, off:off + nc])                   # (N, nc)
        off += nc
    return preds


# ----------------------------------------------------------------------------
# Deterministic parameter initialization (shapes from the module's __init__).
# ----------------------------------------------------------------------------
def init_params(key, in_dim, feat_dim, ff_dim, n_proj=2):
    ks = jax.random.split(key, 16)
    nrm = lambda k, shape, std: std * jax.random.normal(k, shape, jnp.float32)
    E, FF = feat_dim, ff_dim
    params = {
        "projectors": [(nrm(ks[i], (in_dim, E), 0.05), jnp.zeros((E,), jnp.float32))
                       for i in range(n_proj)],
        "w_in": nrm(ks[4], (3 * E, E), 0.05), "b_in": jnp.zeros((1, 3 * E), jnp.float32),
        "w_out": nrm(ks[5], (E, E), 0.05),    "b_out": jnp.zeros((1, E), jnp.float32),
        "w1": nrm(ks[6], (FF, E), 0.05),      "b1": jnp.zeros((1, FF), jnp.float32),
        "w2": nrm(ks[7], (E, FF), 0.05),      "b2": jnp.zeros((1, E), jnp.float32),
        "g1": jnp.ones((1, E), jnp.float32),  "be1": jnp.zeros((1, E), jnp.float32),
        "g2": jnp.ones((1, E), jnp.float32),  "be2": jnp.zeros((1, E), jnp.float32),
    }
    # prototypes: weight ~ N(0, 0.01), bias = 0 (matches _init_fc), packed.
    w_list = [nrm(ks[8 + i], (E, nc), 0.01) for i, nc in enumerate(NUM_CLASSES)]
    params["w_proto"] = jnp.concatenate(w_list, axis=1)                # (E, TOT)
    params["b_proto"] = jnp.zeros((1, TOT_CLASSES), jnp.float32)
    return params


if __name__ == "__main__":
    N, C, HW = 2, 4, 16          # batch, channels, spatial
    E, H, FF = 32, 4, 64         # feat_dim, n_heads, sa_dim_ff
    L2_NORM = True

    key = jax.random.PRNGKey(0)
    k_derm, k_clin, k_par = jax.random.split(key, 3)
    derm_imgs = jax.random.normal(k_derm, (N, C, HW, HW), jnp.float32)
    clinic_imgs = jax.random.normal(k_clin, (N, C, HW, HW), jnp.float32)
    params = init_params(k_par, in_dim=2 * C, feat_dim=E, ff_dim=FF, n_proj=2)

    # One-time weight transforms (scale folding / transpose / bf16 / padding).
    fused = prepare_fused_params(params, n_heads=H)

    fwd = jax.jit(functools.partial(model_forward, n_heads=H, l2_norm=L2_NORM,
                                    use_pallas=True))
    preds = jax.block_until_ready(fwd(derm_imgs, clinic_imgs,
                                      params["projectors"], fused))

    # correctness check against a pure-JAX reference of the same math
    preds_ref = model_forward(derm_imgs, clinic_imgs, params["projectors"],
                              fused, n_heads=H, l2_norm=L2_NORM,
                              use_pallas=False)
    preds_ref = jax.block_until_ready(preds_ref)
    for i, (a, b) in enumerate(zip(preds, preds_ref)):
        assert a.shape == (N, NUM_CLASSES[i]), (i, a.shape)
        assert jnp.allclose(a, b, rtol=1e-2, atol=1e-3), f"mismatch in head {i}"

    print("KERNEL_OK")
</pallas_src>

<mosaic_0001>
module attributes {stable_mosaic.version = 11 : i64} {
  func.func @mlc_sa_kernel(%arg0: i32, %arg1: memref<1x2x32xf32, #tpu.memory_space<vmem>>, %arg2: memref<32x96xbf16, #tpu.memory_space<vmem>>, %arg3: memref<1x96xf32, #tpu.memory_space<vmem>>, %arg4: memref<32x32xbf16, #tpu.memory_space<vmem>>, %arg5: memref<1x32xf32, #tpu.memory_space<vmem>>, %arg6: memref<32x64xbf16, #tpu.memory_space<vmem>>, %arg7: memref<1x64xf32, #tpu.memory_space<vmem>>, %arg8: memref<64x32xbf16, #tpu.memory_space<vmem>>, %arg9: memref<1x32xf32, #tpu.memory_space<vmem>>, %arg10: memref<1x32xf32, #tpu.memory_space<vmem>>, %arg11: memref<1x32xf32, #tpu.memory_space<vmem>>, %arg12: memref<1x32xf32, #tpu.memory_space<vmem>>, %arg13: memref<1x32xf32, #tpu.memory_space<vmem>>, %arg14: memref<32x128xbf16, #tpu.memory_space<vmem>>, %arg15: memref<1x128xf32, #tpu.memory_space<vmem>>, %arg16: memref<1x2x128xf32, #tpu.memory_space<vmem>>) attributes {dimension_semantics = [#tpu.dimension_semantics<parallel>], iteration_bounds = array<i64: 2>, scalar_prefetch = 0 : i64, scratch_operands = 0 : i64, tpu.core_type = #tpu.core_type<tc>, window_params = [{transform_indices = @transform_0, window_bounds = array<i64: 1, 2, 32>}, {pipeline_mode = #tpu.pipeline_mode<synchronous>, transform_indices = @transform_1, window_bounds = array<i64: 32, 96>}, {pipeline_mode = #tpu.pipeline_mode<synchronous>, transform_indices = @transform_2, window_bounds = array<i64: 1, 96>}, {pipeline_mode = #tpu.pipeline_mode<synchronous>, transform_indices = @transform_3, window_bounds = array<i64: 32, 32>}, {pipeline_mode = #tpu.pipeline_mode<synchronous>, transform_indices = @transform_4, window_bounds = array<i64: 1, 32>}, {pipeline_mode = #tpu.pipeline_mode<synchronous>, transform_indices = @transform_5, window_bounds = array<i64: 32, 64>}, {pipeline_mode = #tpu.pipeline_mode<synchronous>, transform_indices = @transform_6, window_bounds = array<i64: 1, 64>}, {pipeline_mode = #tpu.pipeline_mode<synchronous>, transform_indices = @transform_7, window_bounds = array<i64: 64, 32>}, {pipeline_mode = #tpu.pipeline_mode<synchronous>, transform_indices = @transform_8, window_bounds = array<i64: 1, 32>}, {pipeline_mode = #tpu.pipeline_mode<synchronous>, transform_indices = @transform_9, window_bounds = array<i64: 1, 32>}, {pipeline_mode = #tpu.pipeline_mode<synchronous>, transform_indices = @transform_10, window_bounds = array<i64: 1, 32>}, {pipeline_mode = #tpu.pipeline_mode<synchronous>, transform_indices = @transform_11, window_bounds = array<i64: 1, 32>}, {pipeline_mode = #tpu.pipeline_mode<synchronous>, transform_indices = @transform_12, window_bounds = array<i64: 1, 32>}, {pipeline_mode = #tpu.pipeline_mode<synchronous>, transform_indices = @transform_13, window_bounds = array<i64: 32, 128>}, {pipeline_mode = #tpu.pipeline_mode<synchronous>, transform_indices = @transform_14, window_bounds = array<i64: 1, 128>}, {transform_indices = @transform_15, window_bounds = array<i64: 1, 2, 128>}]} {
    %c0 = arith.constant 0 : index
    %c0_0 = arith.constant 0 : index
    %0 = vector.load %arg2[%c0, %c0_0] : memref<32x96xbf16, #tpu.memory_space<vmem>>, vector<32x96xbf16>
    %c0_1 = arith.constant 0 : index
    %c0_2 = arith.constant 0 : index
    %1 = vector.load %arg3[%c0_1, %c0_2] : memref<1x96xf32, #tpu.memory_space<vmem>>, vector<1x96xf32>
    %c0_3 = arith.constant 0 : index
    %c0_4 = arith.constant 0 : index
    %2 = vector.load %arg4[%c0_3, %c0_4] : memref<32x32xbf16, #tpu.memory_space<vmem>>, vector<32x32xbf16>
    %c0_5 = arith.constant 0 : index
    %c0_6 = arith.constant 0 : index
    %3 = vector.load %arg5[%c0_5, %c0_6] : memref<1x32xf32, #tpu.memory_space<vmem>>, vector<1x32xf32>
    %c0_7 = arith.constant 0 : index
    %c0_8 = arith.constant 0 : index
    %4 = vector.load %arg6[%c0_7, %c0_8] : memref<32x64xbf16, #tpu.memory_space<vmem>>, vector<32x64xbf16>
    %c0_9 = arith.constant 0 : index
    %c0_10 = arith.constant 0 : index
    %5 = vector.load %arg7[%c0_9, %c0_10] : memref<1x64xf32, #tpu.memory_space<vmem>>, vector<1x64xf32>
    %c0_11 = arith.constant 0 : index
    %c0_12 = arith.constant 0 : index
    %6 = vector.load %arg8[%c0_11, %c0_12] : memref<64x32xbf16, #tpu.memory_space<vmem>>, vector<64x32xbf16>
    %c0_13 = arith.constant 0 : index
    %c0_14 = arith.constant 0 : index
    %7 = vector.load %arg9[%c0_13, %c0_14] : memref<1x32xf32, #tpu.memory_space<vmem>>, vector<1x32xf32>
    %c0_15 = arith.constant 0 : index
    %c0_16 = arith.constant 0 : index
    %8 = vector.load %arg10[%c0_15, %c0_16] : memref<1x32xf32, #tpu.memory_space<vmem>>, vector<1x32xf32>
    %c0_17 = arith.constant 0 : index
    %c0_18 = arith.constant 0 : index
    %9 = vector.load %arg11[%c0_17, %c0_18] : memref<1x32xf32, #tpu.memory_space<vmem>>, vector<1x32xf32>
    %c0_19 = arith.constant 0 : index
    %c0_20 = arith.constant 0 : index
    %10 = vector.load %arg12[%c0_19, %c0_20] : memref<1x32xf32, #tpu.memory_space<vmem>>, vector<1x32xf32>
    %c0_21 = arith.constant 0 : index
    %c0_22 = arith.constant 0 : index
    %11 = vector.load %arg13[%c0_21, %c0_22] : memref<1x32xf32, #tpu.memory_space<vmem>>, vector<1x32xf32>
    %c0_23 = arith.constant 0 : index
    %c0_24 = arith.constant 0 : index
    %12 = vector.load %arg14[%c0_23, %c0_24] : memref<32x128xbf16, #tpu.memory_space<vmem>>, vector<32x128xbf16>
    %c0_25 = arith.constant 0 : index
    %c0_26 = arith.constant 0 : index
    %13 = vector.load %arg15[%c0_25, %c0_26] : memref<1x128xf32, #tpu.memory_space<vmem>>, vector<1x128xf32>
    %c0_27 = arith.constant 0 : index
    %c0_28 = arith.constant 0 : index
    %c0_29 = arith.constant 0 : index
    %14 = vector.load %arg1[%c0_27, %c0_28, %c0_29] : memref<1x2x32xf32, #tpu.memory_space<vmem>>, vector<1x2x32xf32>
    %15 = vector.shape_cast %14 : vector<1x2x32xf32> to vector<2x32xf32>
    %16 = arith.truncf %15 : vector<2x32xf32> to vector<2x32xbf16>
    %cst = arith.constant dense<0.000000e+00> : vector<2x96xf32>
    %17 = tpu.matmul %16, %0, %cst {dimension_numbers = #tpu.dot_dimension_numbers<[1], [0], [0], [1], [0, 0, 1, 1], [], []>} : vector<2x32xbf16>, vector<32x96xbf16>, vector<2x96xf32> -> vector<2x96xf32>
    %18 = vector.broadcast %1 : vector<1x96xf32> to vector<2x96xf32>
    %19 = arith.addf %17, %18 : vector<2x96xf32>
    %20 = vector.extract_strided_slice %19 {offsets = [0, 0], sizes = [2, 32], strides = [1, 1]} : vector<2x96xf32> to vector<2x32xf32>
    %21 = vector.extract_strided_slice %19 {offsets = [0, 32], sizes = [2, 32], strides = [1, 1]} : vector<2x96xf32> to vector<2x32xf32>
    %22 = vector.extract_strided_slice %19 {offsets = [0, 64], sizes = [2, 32], strides = [1, 1]} : vector<2x96xf32> to vector<2x32xf32>
    %23 = vector.shape_cast %20 : vector<2x32xf32> to vector<1x2x4x8xf32>
    %24 = tpu.transpose %23, [0, 2, 1, 3] : vector<1x2x4x8xf32> -> vector<1x4x2x8xf32>
    %25 = vector.shape_cast %24 : vector<1x4x2x8xf32> to vector<4x2x8xf32>
    %26 = arith.truncf %25 : vector<4x2x8xf32> to vector<4x2x8xbf16>
    %27 = vector.shape_cast %21 : vector<2x32xf32> to vector<1x2x4x8xf32>
    %28 = tpu.transpose %27, [0, 2, 1, 3] : vector<1x2x4x8xf32> -> vector<1x4x2x8xf32>
    %29 = vector.shape_cast %28 : vector<1x4x2x8xf32> to vector<4x2x8xf32>
    %30 = arith.truncf %29 : vector<4x2x8xf32> to vector<4x2x8xbf16>
    %31 = vector.shape_cast %22 : vector<2x32xf32> to vector<1x2x4x8xf32>
    %32 = tpu.transpose %31, [0, 2, 1, 3] : vector<1x2x4x8xf32> -> vector<1x4x2x8xf32>
    %33 = vector.shape_cast %32 : vector<1x4x2x8xf32> to vector<4x2x8xf32>
    %34 = arith.truncf %33 : vector<4x2x8xf32> to vector<4x2x8xbf16>
    "tpu.trace_start"() <{level = 10 : i32, message = "bqd,bkd->bqk"}> : () -> ()
    %cst_30 = arith.constant dense<0.000000e+00> : vector<4x2x2xf32>
    %35 = tpu.matmul %26, %30, %cst_30 {dimension_numbers = #tpu.dot_dimension_numbers<[2], [2], [1], [1], [0, 0, 0, 1, 1, 1], [0], [0]>} : vector<4x2x8xbf16>, vector<4x2x8xbf16>, vector<4x2x2xf32> -> vector<4x2x2xf32>
    "tpu.trace_stop"() : () -> ()
    %cst_31 = arith.constant dense<0xFF800000> : vector<4x2xf32>
    %36 = vector.multi_reduction <maximumf>, %35, %cst_31 [2] : vector<4x2x2xf32> to vector<4x2xf32>
    %37 = vector.shape_cast %36 : vector<4x2xf32> to vector<4x2x1xf32>
    %38 = vector.broadcast %37 : vector<4x2x1xf32> to vector<4x2x2xf32>
    %39 = arith.subf %35, %38 : vector<4x2x2xf32>
    %40 = math.exp %39 : vector<4x2x2xf32>
    %cst_32 = arith.constant dense<0.000000e+00> : vector<4x2xf32>
    %41 = vector.multi_reduction <add>, %40, %cst_32 [2] : vector<4x2x2xf32> to vector<4x2xf32>
    %42 = vector.shape_cast %41 : vector<4x2xf32> to vector<4x2x1xf32>
    %43 = tpu.reciprocal %42 {approx = true} : vector<4x2x1xf32> -> vector<4x2x1xf32>
    %44 = vector.broadcast %43 : vector<4x2x1xf32> to vector<4x2x2xf32>
    %45 = arith.mulf %40, %44 : vector<4x2x2xf32>
    %46 = arith.truncf %45 : vector<4x2x2xf32> to vector<4x2x2xbf16>
    "tpu.trace_start"() <{level = 10 : i32, message = "bqk,bkd->bqd"}> : () -> ()
    %cst_33 = arith.constant dense<0.000000e+00> : vector<4x2x8xf32>
    %47 = tpu.matmul %46, %34, %cst_33 {dimension_numbers = #tpu.dot_dimension_numbers<[2], [1], [1], [2], [0, 0, 0, 1, 1, 2], [0], [0]>} : vector<4x2x2xbf16>, vector<4x2x8xbf16>, vector<4x2x8xf32> -> vector<4x2x8xf32>
    "tpu.trace_stop"() : () -> ()
    %48 = vector.shape_cast %47 : vector<4x2x8xf32> to vector<1x4x2x8xf32>
    %49 = tpu.transpose %48, [0, 2, 1, 3] : vector<1x4x2x8xf32> -> vector<1x2x4x8xf32>
    %50 = vector.shape_cast %49 : vector<1x2x4x8xf32> to vector<2x32xf32>
    %51 = arith.truncf %50 : vector<2x32xf32> to vector<2x32xbf16>
    %cst_34 = arith.constant dense<0.000000e+00> : vector<2x32xf32>
    %52 = tpu.matmul %51, %2, %cst_34 {dimension_numbers = #tpu.dot_dimension_numbers<[1], [0], [0], [1], [0, 0, 1, 1], [], []>} : vector<2x32xbf16>, vector<32x32xbf16>, vector<2x32xf32> -> vector<2x32xf32>
    %53 = vector.broadcast %3 : vector<1x32xf32> to vector<2x32xf32>
    %54 = arith.addf %52, %53 : vector<2x32xf32>
    %55 = arith.addf %15, %54 : vector<2x32xf32>
    %cst_35 = arith.constant dense<0.000000e+00> : vector<2xf32>
    %56 = vector.multi_reduction <add>, %55, %cst_35 [1] : vector<2x32xf32> to vector<2xf32>
    %57 = vector.shape_cast %56 : vector<2xf32> to vector<2x1xf32>
    %cst_36 = arith.constant 3.200000e+01 : f32
    %58 = vector.broadcast %cst_36 : f32 to vector<2x1xf32>
    %59 = arith.divf %57, %58 : vector<2x1xf32>
    %60 = vector.broadcast %59 : vector<2x1xf32> to vector<2x32xf32>
    %61 = arith.subf %55, %60 : vector<2x32xf32>
    %62 = arith.mulf %61, %61 : vector<2x32xf32>
    %cst_37 = arith.constant dense<0.000000e+00> : vector<2xf32>
    %63 = vector.multi_reduction <add>, %62, %cst_37 [1] : vector<2x32xf32> to vector<2xf32>
    %64 = vector.shape_cast %63 : vector<2xf32> to vector<2x1xf32>
    %cst_38 = arith.constant 3.200000e+01 : f32
    %65 = vector.broadcast %cst_38 : f32 to vector<2x1xf32>
    %66 = arith.divf %64, %65 : vector<2x1xf32>
    %67 = vector.broadcast %59 : vector<2x1xf32> to vector<2x32xf32>
    %68 = arith.subf %55, %67 : vector<2x32xf32>
    %cst_39 = arith.constant 9.99999974E-6 : f32
    %69 = vector.broadcast %cst_39 : f32 to vector<2x1xf32>
    %70 = arith.addf %66, %69 : vector<2x1xf32>
    %71 = math.rsqrt %70 : vector<2x1xf32>
    %72 = vector.broadcast %71 : vector<2x1xf32> to vector<2x32xf32>
    %73 = arith.mulf %68, %72 : vector<2x32xf32>
    %74 = vector.broadcast %8 : vector<1x32xf32> to vector<2x32xf32>
    %75 = arith.mulf %73, %74 : vector<2x32xf32>
    %76 = vector.broadcast %9 : vector<1x32xf32> to vector<2x32xf32>
    %77 = arith.addf %75, %76 : vector<2x32xf32>
    %78 = arith.truncf %77 : vector<2x32xf32> to vector<2x32xbf16>
    %cst_40 = arith.constant dense<0.000000e+00> : vector<2x64xf32>
    %79 = tpu.matmul %78, %4, %cst_40 {dimension_numbers = #tpu.dot_dimension_numbers<[1], [0], [0], [1], [0, 0, 1, 1], [], []>} : vector<2x32xbf16>, vector<32x64xbf16>, vector<2x64xf32> -> vector<2x64xf32>
    %80 = vector.broadcast %5 : vector<1x64xf32> to vector<2x64xf32>
    %81 = arith.addf %79, %80 : vector<2x64xf32>
    %cst_41 = arith.constant 0.000000e+00 : f32
    %82 = vector.broadcast %cst_41 : f32 to vector<2x64xf32>
    %83 = arith.maximumf %81, %82 : vector<2x64xf32>
    %84 = arith.truncf %83 : vector<2x64xf32> to vector<2x64xbf16>
    %cst_42 = arith.constant dense<0.000000e+00> : vector<2x32xf32>
    %85 = tpu.matmul %84, %6, %cst_42 {dimension_numbers = #tpu.dot_dimension_numbers<[1], [0], [0], [1], [0, 0, 1, 1], [], []>} : vector<2x64xbf16>, vector<64x32xbf16>, vector<2x32xf32> -> vector<2x32xf32>
    %86 = vector.broadcast %7 : vector<1x32xf32> to vector<2x32xf32>
    %87 = arith.addf %85, %86 : vector<2x32xf32>
    %88 = arith.addf %77, %87 : vector<2x32xf32>
    %cst_43 = arith.constant dense<0.000000e+00> : vector<2xf32>
    %89 = vector.multi_reduction <add>, %88, %cst_43 [1] : vector<2x32xf32> to vector<2xf32>
    %90 = vector.shape_cast %89 : vector<2xf32> to vector<2x1xf32>
    %cst_44 = arith.constant 3.200000e+01 : f32
    %91 = vector.broadcast %cst_44 : f32 to vector<2x1xf32>
    %92 = arith.divf %90, %91 : vector<2x1xf32>
    %93 = vector.broadcast %92 : vector<2x1xf32> to vector<2x32xf32>
    %94 = arith.subf %88, %93 : vector<2x32xf32>
    %95 = arith.mulf %94, %94 : vector<2x32xf32>
    %cst_45 = arith.constant dense<0.000000e+00> : vector<2xf32>
    %96 = vector.multi_reduction <add>, %95, %cst_45 [1] : vector<2x32xf32> to vector<2xf32>
    %97 = vector.shape_cast %96 : vector<2xf32> to vector<2x1xf32>
    %cst_46 = arith.constant 3.200000e+01 : f32
    %98 = vector.broadcast %cst_46 : f32 to vector<2x1xf32>
    %99 = arith.divf %97, %98 : vector<2x1xf32>
    %100 = vector.broadcast %92 : vector<2x1xf32> to vector<2x32xf32>
    %101 = arith.subf %88, %100 : vector<2x32xf32>
    %cst_47 = arith.constant 9.99999974E-6 : f32
    %102 = vector.broadcast %cst_47 : f32 to vector<2x1xf32>
    %103 = arith.addf %99, %102 : vector<2x1xf32>
    %104 = math.rsqrt %103 : vector<2x1xf32>
    %105 = vector.broadcast %104 : vector<2x1xf32> to vector<2x32xf32>
    %106 = arith.mulf %101, %105 : vector<2x32xf32>
    %107 = vector.broadcast %10 : vector<1x32xf32> to vector<2x32xf32>
    %108 = arith.mulf %106, %107 : vector<2x32xf32>
    %109 = vector.broadcast %11 : vector<1x32xf32> to vector<2x32xf32>
    %110 = arith.addf %108, %109 : vector<2x32xf32>
    %111 = arith.mulf %110, %110 : vector<2x32xf32>
    %cst_48 = arith.constant dense<0.000000e+00> : vector<2xf32>
    %112 = vector.multi_reduction <add>, %111, %cst_48 [1] : vector<2x32xf32> to vector<2xf32>
    %113 = vector.shape_cast %112 : vector<2xf32> to vector<2x1xf32>
    %cst_49 = arith.constant 1.000000e-24 : f32
    %114 = vector.broadcast %cst_49 : f32 to vector<2x1xf32>
    %115 = arith.maximumf %113, %114 : vector<2x1xf32>
    %116 = math.rsqrt %115 : vector<2x1xf32>
    %117 = vector.broadcast %116 : vector<2x1xf32> to vector<2x32xf32>
    %118 = arith.mulf %110, %117 : vector<2x32xf32>
    %119 = arith.truncf %118 : vector<2x32xf32> to vector<2x32xbf16>
    %cst_50 = arith.constant dense<0.000000e+00> : vector<2x128xf32>
    %120 = tpu.matmul %119, %12, %cst_50 {dimension_numbers = #tpu.dot_dimension_numbers<[1], [0], [0], [1], [0, 0, 1, 1], [], []>} : vector<2x32xbf16>, vector<32x128xbf16>, vector<2x128xf32> -> vector<2x128xf32>
    %121 = vector.broadcast %13 : vector<1x128xf32> to vector<2x128xf32>
    %122 = arith.addf %120, %121 : vector<2x128xf32>
    %123 = vector.shape_cast %122 : vector<2x128xf32> to vector<1x2x128xf32>
    %c0_51 = arith.constant 0 : index
    %c0_52 = arith.constant 0 : index
    %c0_53 = arith.constant 0 : index
    %124 = vector.load %arg16[%c0_51, %c0_52, %c0_53] : memref<1x2x128xf32, #tpu.memory_space<vmem>>, vector<1x2x128xf32>
    tpu.vector_store %arg16[%c0_51, %c0_52, %c0_53], %123 {strides = array<i32>} : memref<1x2x128xf32, #tpu.memory_space<vmem>>, vector<1x2x128xf32>,
    return
  }
  func.func @transform_0(%arg0: i32) -> (i32, i32, i32) {
    %c0_i32 = arith.constant 0 : i32
    %c0_i32_0 = arith.constant 0 : i32
    %c0_i32_1 = arith.constant 0 : i32
    return %arg0, %c0_i32, %c0_i32_0 : i32, i32, i32
  }
  func.func @transform_1(%arg0: i32) -> (i32, i32) {
    %c0_i32 = arith.constant 0 : i32
    %c0_i32_0 = arith.constant 0 : i32
    %c0_i32_1 = arith.constant 0 : i32
    return %c0_i32, %c0_i32_0 : i32, i32
  }
  func.func @transform_2(%arg0: i32) -> (i32, i32) {
    %c0_i32 = arith.constant 0 : i32
    %c0_i32_0 = arith.constant 0 : i32
    %c0_i32_1 = arith.constant 0 : i32
    return %c0_i32, %c0_i32_0 : i32, i32
  }
  func.func @transform_3(%arg0: i32) -> (i32, i32) {
    %c0_i32 = arith.constant 0 : i32
    %c0_i32_0 = arith.constant 0 : i32
    %c0_i32_1 = arith.constant 0 : i32
    return %c0_i32, %c0_i32_0 : i32, i32
  }
  func.func @transform_4(%arg0: i32) -> (i32, i32) {
    %c0_i32 = arith.constant 0 : i32
    %c0_i32_0 = arith.constant 0 : i32
    %c0_i32_1 = arith.constant 0 : i32
    return %c0_i32, %c0_i32_0 : i32, i32
  }
  func.func @transform_5(%arg0: i32) -> (i32, i32) {
    %c0_i32 = arith.constant 0 : i32
    %c0_i32_0 = arith.constant 0 : i32
    %c0_i32_1 = arith.constant 0 : i32
    return %c0_i32, %c0_i32_0 : i32, i32
  }
  func.func @transform_6(%arg0: i32) -> (i32, i32) {
    %c0_i32 = arith.constant 0 : i32
    %c0_i32_0 = arith.constant 0 : i32
    %c0_i32_1 = arith.constant 0 : i32
    return %c0_i32, %c0_i32_0 : i32, i32
  }
  func.func @transform_7(%arg0: i32) -> (i32, i32) {
    %c0_i32 = arith.constant 0 : i32
    %c0_i32_0 = arith.constant 0 : i32
    %c0_i32_1 = arith.constant 0 : i32
    return %c0_i32, %c0_i32_0 : i32, i32
  }
  func.func @transform_8(%arg0: i32) -> (i32, i32) {
    %c0_i32 = arith.constant 0 : i32
    %c0_i32_0 = arith.constant 0 : i32
    %c0_i32_1 = arith.constant 0 : i32
    return %c0_i32, %c0_i32_0 : i32, i32
  }
  func.func @transform_9(%arg0: i32) -> (i32, i32) {
    %c0_i32 = arith.constant 0 : i32
    %c0_i32_0 = arith.constant 0 : i32
    %c0_i32_1 = arith.constant 0 : i32
    return %c0_i32, %c0_i32_0 : i32, i32
  }
  func.func @transform_10(%arg0: i32) -> (i32, i32) {
    %c0_i32 = arith.constant 0 : i32
    %c0_i32_0 = arith.constant 0 : i32
    %c0_i32_1 = arith.constant 0 : i32
    return %c0_i32, %c0_i32_0 : i32, i32
  }
  func.func @transform_11(%arg0: i32) -> (i32, i32) {
    %c0_i32 = arith.constant 0 : i32
    %c0_i32_0 = arith.constant 0 : i32
    %c0_i32_1 = arith.constant 0 : i32
    return %c0_i32, %c0_i32_0 : i32, i32
  }
  func.func @transform_12(%arg0: i32) -> (i32, i32) {
    %c0_i32 = arith.constant 0 : i32
    %c0_i32_0 = arith.constant 0 : i32
    %c0_i32_1 = arith.constant 0 : i32
    return %c0_i32, %c0_i32_0 : i32, i32
  }
  func.func @transform_13(%arg0: i32) -> (i32, i32) {
    %c0_i32 = arith.constant 0 : i32
    %c0_i32_0 = arith.constant 0 : i32
    %c0_i32_1 = arith.constant 0 : i32
    return %c0_i32, %c0_i32_0 : i32, i32
  }
  func.func @transform_14(%arg0: i32) -> (i32, i32) {
    %c0_i32 = arith.constant 0 : i32
    %c0_i32_0 = arith.constant 0 : i32
    %c0_i32_1 = arith.constant 0 : i32
    return %c0_i32, %c0_i32_0 : i32, i32
  }
  func.func @transform_15(%arg0: i32) -> (i32, i32, i32) {
    %c0_i32 = arith.constant 0 : i32
    %c0_i32_0 = arith.constant 0 : i32
    %c0_i32_1 = arith.constant 0 : i32
    return %arg0, %c0_i32, %c0_i32_0 : i32, i32, i32
  }
}

</mosaic_0001>

<bundles_post_ra>
// kernel: model_forward.1
= control target key start
LH: loop header
LB: loop body
LE: loop exit
PB: predicated region body
PF: predicated region fallthrough
CT: control target
= control target key end

     0   :  { %s2002_s18 = smov 0   ;;  %s2245_s0 = inlined_call_operand.vmem [shape: f32[2,2,32], index: 0, kind: input, shape index: {}]   ;;  %s2246_s1 = inlined_call_operand.vmem [shape: bf16[32,96], index: 1, kind: input, shape index: {}]   ;;  %s2247_s2 = inlined_call_operand.vmem [shape: f32[1,96], index: 2, kind: input, shape index: {}]   ;;  %s2248_s3 = inlined_call_operand.vmem [shape: bf16[32,32], index: 3, kind: input, shape index: {}]   ;;  %s2249_s4 = inlined_call_operand.vmem [shape: f32[1,32], index: 4, kind: input, shape index: {}]   ;;  %s2250_s5 = inlined_call_operand.vmem [shape: bf16[32,64], index: 5, kind: input, shape index: {}]   ;;  %s2251_s6 = inlined_call_operand.vmem [shape: f32[1,64], index: 6, kind: input, shape index: {}]   ;;  %s2252_s7 = inlined_call_operand.vmem [shape: bf16[64,32], index: 7, kind: input, shape index: {}]   ;;  %s2253_s8 = inlined_call_operand.vmem [shape: f32[1,32], index: 8, kind: input, shape index: {}]   ;;  %s2254_s9 = inlined_call_operand.vmem [shape: f32[1,32], index: 9, kind: input, shape index: {}]   ;;  %s2255_s10 = inlined_call_operand.vmem [shape: f32[1,32], index: 10, kind: input, shape index: {}]   ;;  %s2256_s11 = inlined_call_operand.vmem [shape: f32[1,32], index: 11, kind: input, shape index: {}]   ;;  %s2257_s12 = inlined_call_operand.vmem [shape: f32[1,32], index: 12, kind: input, shape index: {}]   ;;  %s2258_s13 = inlined_call_operand.vmem [shape: bf16[32,128], index: 13, kind: input, shape index: {}]   ;;  %s2259_s14 = inlined_call_operand.vmem [shape: f32[1,128], index: 14, kind: input, shape index: {}]   ;;  %s2260_s15 = inlined_call_operand.vmem [shape: f32[2,2,128], index: 15, kind: output, shape index: {}]  }
   0x1 LB: > { %s1680_s19 = sadd.s32 4294967295, %s1908_s18   ;;  %p1684_p0 = scmp.ge.s32.totalorder %s1908_s18, 1  ;;  %s1908_s18 = sphi %s2002_s18, %s25_s18  }
   0x2   : > { %p436_p1 = scmp.lt.s32.totalorder %s1908_s18, 3 }
   0x4   : > { %p437_p2 = pnand %p1684_p0, %p436_p1 }
   0x5   : > { %p482_p3 = scmp.lt.s32.totalorder (!%p437_p2), %s1680_s19, 1  ;;  %s1912_s30 = smov (!%p437_p2), 104  }
   0x6   : > { %440 = sbr.rel (%p437_p2) target bundleno = 2939 (0xb7b), region = 80  ;;  %s1913_s16 = smov (!%p437_p2), 120  }
   0x7   : > { %s1914_s17 = smov (!%p437_p2), 96   ;;  %s1915_s20 = smov (!%p437_p2), 112  }
   0x8   : > { %s1918_s21 = smov (!%p437_p2), 64   ;;  %s1920_s28 = smov (!%p437_p2), 8  }
   0x9   : > { %s1921_s29 = smov (!%p437_p2), 24  }
   0xb   : > { %v1868_v0 = vld [vmem:[%s2246_s1 + $0x8] sm:$0xff]   ;;  %v1910_v1 = vmov 0.0   ;;  %v1869_v2 = vld [vmem:[%s2246_s1] sm:$0xff]   ;;  %vm1911_vm0 = vmmov 0   ;;  %s2262_s19 = smov (!%p482_p3, %s1680_s19), 1  ;;  %vm544_vm1 = vcmask 261120   ;;  %v602_v16 = vlaneseq }
   0xc   : > { %1756 = vmatprep.subr.bf16.mxu0 %v1910_v1  ;;  %1764 = vmatprep.subr.bf16.mxu1 %v1910_v1  ;;  %s1685_s24 = sshll.u32 %s2262_s19, 1  ;;  %v1687_v5 = vld [vmem:[%s2247_s2] ss:$0 sm:$0xff]  ;;  %v1916_v14 = vmov 1983009808   ;;  %vm805_vm2 = vcmask 64512  }
   0xd   : > { %1757 = vmatpush3.bf16.msra.mxu0 %v1868_v0  ;;  %1760 = vmatprep.mubr.msk.bf16.mxu0 %vm1911_vm0, %v1910_v1  ;;  %s485_s27 = scalar_lea.vmem %s2245_s0, %s1685_s24  ;;  %v600_v15 = vunpack.c.l.s4 %v1916_v14  ;;  %v603_v18 = vshrl.u32 %v602_v16, 7  ;;  %v1917_v19 = vmov 1934713408   ;;  %vm990_vm3 = vcmask 9216  }
   0xe   : > { %1758 = vmatprep.subr.bf16.mxu0 %v1910_v1  ;;  %1766 = vmatprep.mubr.msk.bf16.mxu1 %vm1911_vm0, %v1910_v1  ;;  %v2032_v3 = vld [vmem:[%s485_s27] sm:$0x3]  ;;  %v616_v20 = vunpack.c.l.s4 %v1917_v19  ;;  %vm1043_vm4 = vcmask 1040384   ;;  %vm1039_vm5 = vcmask 15360   ;;  %s1919_s27 = smov 16   ;;  %vm1295_vm6 = vcmask 130048  }
   0xf   : > { %v525_v4 = vpack.c.bf16 %v2032_v3, %v2032_v3  ;;  %v601_v17 = vunpack.c.0.s8 %v600_v15  ;;  %vm1297_vm7 = vcmask 195584   ;;  %vm1362_vm8 = vcmask 254976  }
  0x10   : > { %v617_v24 = vunpack.c.0.s8 %v616_v20  ;;  %vm1485_vm9 = vcmask 523264  }
  0x11   : > { %1759 = vmatpush3.bf16.msra.mxu0 %v1869_v2  ;;  %v2059_v22 = vsub.s32 %v601_v17, %v603_v18 }
  0x12   : > { %1770 = vmatprep.subr.bf16.mxu0 %v1910_v1  ;;  %v2065_v29 = vsub.s32 %v617_v24, %v603_v18 }
  0x14   : > { %1761 = vmatmul.mubr.msk.bf16.vlgmr.msra.gmra.mxu0 %vm544_vm1, %v525_v4 }
  0x15   : > { %1772 = vmatprep.mubr.msk.bf16.mxu0 %vm1911_vm0, %v1910_v1 }
  0xd4   : > { %v582_v6 = vpop.f32.mrf.mxu0 }
  0xd5   : > { %v2042_v7 = vadd.f32 %v1687_v5, %v582_v6 }
  0xd6   : > { %v1762_v8 = vpop.f32.mrf.mxu0 }
  0xd7   : > { %595 = vrot.lane.b32.xlu1 %v2042_v7, %s1912_s30  ;;  %589 = vrot.lane.b32.xlu0 %v2042_v7, %s1913_s16 }
  0xd8   : > { %v585_v9 = vpop.f32.mrf.mxu0 }
  0xda   : > { %v1763_v10 = vpop.f32.mrf.mxu0 }
  0xdb   : > { %659 = vrot.lane.b32.xlu1 %v2042_v7, %s1914_s17  ;;  %592 = vrot.lane.b32.xlu0 %v2042_v7, %s1915_s20 }
 0x149   : > { %v2048_v11 = vpop.permute.xlu0 %589  ;;  %v2051_v12 = vpop.permute.xlu1 %595 }
 0x14a   : > { %661 = vrot.lane.b32.xlu0 %v2048_v11, %s1914_s17  ;;  %v606_v23 = vcombine.low %v2048_v11, %v2051_v12 }
 0x14c   : > { %v613_v28 = vrot.slane %v606_v23, %v2059_v22 }
 0x14d   : > { %v2053_v13 = vpop.permute.xlu0 %592  ;;  %v660_v26 = vpop.permute.xlu1 %659 }
 0x14e   : > { %665 = vrot.lane.b32.xlu0 %v2051_v12, %s1914_s17  ;;  %663 = vrot.lane.b32.xlu1 %v2053_v13, %s1914_s17  ;;  %v598_v21 = vcombine.low %v2042_v7, %v2053_v13 }
 0x150   : > { %v605_v25 = vrot.slane %v598_v21, %v2059_v22 }
 0x152   : > { %v614_v30 = vcombine.low %v605_v25, %v613_v28 }
 0x154   : > { %v621_v35 = vrot.slane %v614_v30, %v2065_v29 }
 0x156   : > { %v629_v39 = vcombine.high %v621_v35, %v1910_v1  ;;  %v628_v45 = vrot.slane %v621_v35, %v2059_v22 }
 0x158   : > { %v636_v42 = vrot.slane %v629_v39, %v2059_v22 }
 0x15a   : > { %v637_v49 = vcombine.low %v628_v45, %v636_v42  ;;  %v638_v58 = vcombine.high %v628_v45, %v636_v42 }
 0x15c   : > { %v645_v55 = vrot.slane %v637_v49, %v2065_v29  ;;  %v652_v2 = vrot.slane %v638_v58, %v2065_v29 }
 0x15e   : > { %v653_v59 = vcombine.high %v645_v55, %v1910_v1  ;;  %v655_v61 = vpack.c.bf16 %v645_v55, %v645_v55  ;;  %v654_v5 = vcombine.high %v652_v2, %v1910_v1  ;;  %v657_v6 = vpack.c.bf16 %v652_v2, %v652_v2 }
 0x160   : > { %v656_v0 = vpack.c.bf16 %v653_v59, %v653_v59  ;;  %v658_v8 = vpack.c.bf16 %v654_v5, %v654_v5 }
 0x1bc   : > { %v662_v27 = vpop.permute.xlu0 %661 }
 0x1c0   : > { %v664_v31 = vpop.permute.xlu1 %663  ;;  %v666_v32 = vpop.permute.xlu0 %665 }
 0x1c1   : > { %v671_v33 = vcombine.low %v660_v26, %v664_v31  ;;  %v679_v34 = vcombine.low %v662_v27, %v666_v32 }
 0x1c3   : > { %v678_v36 = vrot.slane %v671_v33, %v2059_v22  ;;  %v686_v37 = vrot.slane %v679_v34, %v2059_v22 }
 0x1c5   : > { %v687_v38 = vcombine.low %v678_v36, %v686_v37 }
 0x1c7   : > { %v694_v40 = vrot.slane %v687_v38, %v2065_v29 }
 0x1c9   : > { %v702_v41 = vcombine.high %v694_v40, %v1910_v1  ;;  %v701_v43 = vrot.slane %v694_v40, %v2059_v22 }
 0x1cb   : > { %v709_v44 = vrot.slane %v702_v41, %v2059_v22 }
 0x1cd   : > { %v710_v46 = vcombine.low %v701_v43, %v709_v44  ;;  %v711_v47 = vcombine.high %v701_v43, %v709_v44 }
 0x1cf   : > { %v718_v48 = vrot.slane %v710_v46, %v2065_v29  ;;  %v725_v52 = vrot.slane %v711_v47, %v2065_v29 }
 0x1d1   : > { %v728_v50 = vpack.c.bf16 %v718_v48, %v718_v48  ;;  %v726_v51 = vcombine.high %v718_v48, %v1910_v1  ;;  %v727_v57 = vcombine.high %v725_v52, %v1910_v1  ;;  %v730_v60 = vpack.c.bf16 %v725_v52, %v725_v52 }
 0x1d3   : > { %v810_v53 = vsel %vm805_vm2, %v728_v50, 0  ;;  %v729_v54 = vpack.c.bf16 %v726_v51, %v726_v51  ;;  %v731_v62 = vpack.c.bf16 %v727_v57, %v727_v57  ;;  %v902_v63 = vsel %vm805_vm2, %v730_v60, 0 }
 0x1d4   : > { %1765 = vmatpush3.bf16.xpose.msra.mxu1 %v810_v53 }
 0x1d5   : > { %v856_v56 = vsel %vm805_vm2, %v729_v54, 0  ;;  %1776 = vmatprep.subr.bf16.mxu1 %v1910_v1  ;;  %v948_v4 = vsel %vm805_vm2, %v731_v62, 0 }
 0x1d6   : > { %1771 = vmatpush3.bf16.xpose.msra.mxu0 %v856_v56 }
 0x1d7   : > { %1782 = vmatprep.subr.bf16.mxu0 %v1910_v1 }
 0x1db   : > { %1767 = vmatmul.mubr.msk.bf16.vlgmr.msra.gmra.mxu1 %vm805_vm2, %v655_v61 }
 0x1dc   : > { %1777 = vmatpush3.bf16.xpose.msra.mxu1 %v902_v63  ;;  %1778 = vmatprep.mubr.msk.bf16.mxu1 %vm1911_vm0, %v1910_v1 }
 0x1dd   : > { %1773 = vmatmul.mubr.msk.bf16.vlgmr.msra.gmra.mxu0 %vm805_vm2, %v656_v0  ;;  %1788 = vmatprep.subr.bf16.mxu1 %v1910_v1 }
 0x1de   : > { %1783 = vmatpush3.bf16.xpose.msra.mxu0 %v948_v4  ;;  %1784 = vmatprep.mubr.msk.bf16.mxu0 %vm1911_vm0, %v1910_v1 }
 0x1df   : > { %1794 = vmatprep.subr.bf16.mxu0 %v1910_v1 }
 0x1e3   : > { %1779 = vmatmul.mubr.msk.bf16.vlgmr.msra.gmra.mxu1 %vm805_vm2, %v657_v6 }
 0x1e4   : > { %1790 = vmatprep.mubr.msk.bf16.mxu1 %vm1911_vm0, %v1910_v1 }
 0x1e5   : > { %1785 = vmatmul.mubr.msk.bf16.vlgmr.msra.gmra.mxu0 %vm805_vm2, %v658_v8 }
 0x1e6   : > { %1796 = vmatprep.mubr.msk.bf16.mxu0 %vm1911_vm0, %v1910_v1 }
 0x29b   : > { %v846_v9 = vpop.f32.mrf.mxu1 }
 0x29c   : > { %v991_v10 = vsel %vm990_vm3, %v846_v9, -inf }
 0x29d   : > { %992 = vmax.xlane.f32.xlu1 %v991_v10  ;;  %v1768_v14 = vpop.f32.mrf.mxu1  ;;  %v892_v15 = vpop.f32.mrf.mxu0 }
 0x29e   : > { %v994_v16 = vsel %vm990_vm3, %v892_v15, -inf }
 0x29f   : > { %v849_v17 = vpop.f32.mrf.mxu1  ;;  %995 = vmax.xlane.f32.xlu0 %v994_v16  ;;  %v1774_v18 = vpop.f32.mrf.mxu0 }
 0x2a1   : > { %v1769_v19 = vpop.f32.mrf.mxu1  ;;  %v895_v20 = vpop.f32.mrf.mxu0 }
 0x2a3   : > { %v1775_v21 = vpop.f32.mrf.mxu0  ;;  %v938_v23 = vpop.f32.mrf.mxu1 }
 0x2a4   : > { %v997_v24 = vsel %vm990_vm3, %v938_v23, -inf }
 0x2a5   : > { %v1780_v25 = vpop.f32.mrf.mxu1  ;;  %998 = vmax.xlane.f32.xlu0 %v997_v24  ;;  %v984_v26 = vpop.f32.mrf.mxu0 }
 0x2a6   : > { %v1000_v27 = vsel %vm990_vm3, %v984_v26, -inf }
 0x2a7   : > { %v941_v28 = vpop.f32.mrf.mxu1  ;;  %1001 = vmax.xlane.f32.xlu1 %v1000_v27  ;;  %v1786_v30 = vpop.f32.mrf.mxu0 }
 0x2a9   : > { %v1781_v31 = vpop.f32.mrf.mxu1  ;;  %v987_v32 = vpop.f32.mrf.mxu0 }
 0x2ab   : > { %v1787_v33 = vpop.f32.mrf.mxu0 }
 0x2b8   : > { %734 = vrot.lane.b32.xlu1 %v2048_v11, %s1918_s21 }
 0x2bb   : > { %732 = vrot.lane.b32.xlu0 %v2042_v7, %s1918_s21 }
 0x326   : > { %v993_v34 = vpop.xlane.xlu1 %992 }
 0x327   : > { %v1003_v35 = vsub.f32 %v846_v9, %v993_v34 }
 0x328   : > { %v996_v36 = vpop.xlane.xlu0 %995 }
 0x329   : > { %v1007_v37 = vmul.f32 1.442695, %v1003_v35  ;;  %v1004_v38 = vsub.f32 %v892_v15, %v996_v36 }
 0x32b   : > { %1880 = vpow2.f32 %v1007_v37  ;;  %v1009_v39 = vmul.f32 1.442695, %v1004_v38 }
 0x32d   : > { %1882 = vpow2.f32 %v1009_v39 }
 0x32e   : > { %v999_v11 = vpop.xlane.xlu0 %998 }
 0x32f   : > { %v1005_v45 = vsub.f32 %v938_v23, %v999_v11 }
 0x330   : > { %v1002_v7 = vpop.xlane.xlu1 %1001 }
 0x331   : > { %v1006_v44 = vsub.f32 %v984_v26, %v1002_v7  ;;  %v1011_v47 = vmul.f32 1.442695, %v1005_v45 }
 0x333   : > { %v1013_v46 = vmul.f32 1.442695, %v1006_v44 }
 0x335   : > { %1884 = vpow2.f32 %v1013_v46 }
 0x336   : > { %1886 = vpow2.f32 %v1011_v47 }
 0x338   : > { %v1881_v40 = vpop.eup %1880 }
 0x339   : > { %v1015_v41 = vsel %vm990_vm3, %v1881_v40, 0.0 }
 0x33a   : > { %v1883_v42 = vpop.eup %1882  ;;  %1016 = vadd.xlane.f32.xlu0 %v1015_v41 }
 0x33b   : > { %v1018_v43 = vsel %vm990_vm3, %v1883_v42, 0.0 }
 0x33c   : > { %1019 = vadd.xlane.f32.xlu1 %v1018_v43 }
 0x342   : > { %v1885_v48 = vpop.eup %1884 }
 0x343   : > { %v2115_v49 = vpop.eup %1886  ;;  %v1024_v50 = vsel %vm990_vm3, %v1885_v48, 0.0 }
 0x344   : > { %v1021_v51 = vsel %vm990_vm3, %v2115_v49, 0.0 }
 0x34d   : > { %736 = vrot.lane.b32.xlu1 %v2053_v13, %s1918_s21  ;;  %v733_v13 = vpop.permute.xlu0 %732 }
 0x350   : > { %738 = vrot.lane.b32.xlu0 %v2051_v12, %s1918_s21  ;;  %v735_v12 = vpop.permute.xlu1 %734 }
 0x36f   : > { %1025 = vadd.xlane.f32.xlu0 %v1024_v50  ;;  %v1870_v50 = vld [vmem:[%s2248_s3 + $0x8] sm:$0xff]  }
 0x371   : > { %1022 = vadd.xlane.f32.xlu1 %v1021_v51 }
 0x3c3   : > { %v1017_v52 = vpop.xlane.xlu0 %1016 }
 0x3c4   : > { %1888 = vrcp.f32 %v1017_v52 }
 0x3c5   : > { %v1020_v53 = vpop.xlane.xlu1 %1019 }
 0x3c6   : > { %1890 = vrcp.f32 %v1020_v53 }
 0x3c7   : > { %v739_v54 = vpop.permute.xlu0 %738 }
 0x3c8   : > { %v752_v55 = vcombine.low %v735_v12, %v739_v54 }
 0x3c9   : > { %v737_v56 = vpop.permute.xlu1 %736 }
 0x3ca   : > { %v744_v57 = vcombine.low %v733_v13, %v737_v56  ;;  %v759_v58 = vrot.slane %v752_v55, %v2059_v22  ;;  %v1871_v55 = vld [vmem:[%s2248_s3] sm:$0xff]  }
 0x3cc   : > { %v751_v59 = vrot.slane %v744_v57, %v2059_v22 }
 0x3ce   : > { %v760_v60 = vcombine.low %v751_v59, %v759_v58 }
 0x3d0   : > { %v767_v61 = vrot.slane %v760_v60, %v2065_v29 }
 0x3d1   : > { %v1889_v5 = vpop.eup %1888 }
 0x3d2   : > { %v775_v62 = vcombine.high %v767_v61, %v1910_v1  ;;  %v774_v63 = vrot.slane %v767_v61, %v2059_v22  ;;  %v1031_v15 = vmul.f32 %v1889_v5, %v1881_v40 }
 0x3d3   : > { %v1891_v9 = vpop.eup %1890 }
 0x3d4   : > { %v782_v0 = vrot.slane %v775_v62, %v2059_v22  ;;  %v1032_v20 = vmul.f32 %v1891_v9, %v1883_v42  ;;  %v1035_v23 = vpack.c.bf16 %v1031_v15, %v1031_v15 }
 0x3d6   : > { %v783_v2 = vcombine.low %v774_v63, %v782_v0  ;;  %v784_v4 = vcombine.high %v774_v63, %v782_v0  ;;  %v1036_v26 = vpack.c.bf16 %v1032_v20, %v1032_v20 }
 0x3d8   : > { %v791_v6 = vrot.slane %v783_v2, %v2065_v29  ;;  %v798_v8 = vrot.slane %v784_v4, %v2065_v29 }
 0x3da   : > { %v801_v10 = vpack.c.bf16 %v791_v6, %v791_v6  ;;  %v799_v14 = vcombine.high %v791_v6, %v1910_v1  ;;  %v800_v16 = vcombine.high %v798_v8, %v1910_v1  ;;  %v803_v19 = vpack.c.bf16 %v798_v8, %v798_v8 }
 0x3dc   : > { %v1045_v17 = vsel %vm1043_vm4, %v801_v10, 0  ;;  %v802_v18 = vpack.c.bf16 %v799_v14, %v799_v14  ;;  %v804_v24 = vpack.c.bf16 %v800_v16, %v800_v16  ;;  %v1137_v25 = vsel %vm1043_vm4, %v803_v19, 0  ;;  %v1699_v10 = vld [vmem:[%s2249_s4] ss:$0 sm:$0xff] }
 0x3dd   : > { %1789 = vmatpush3.bf16.msra.mxu1 %v1045_v17 }
 0x3de   : > { %v1091_v21 = vsel %vm1043_vm4, %v802_v18, 0  ;;  %1800 = vmatprep.subr.bf16.mxu1 %v1910_v1  ;;  %v1183_v27 = vsel %vm1043_vm4, %v804_v24, 0 }
 0x3df   : > { %1795 = vmatpush3.bf16.msra.mxu0 %v1091_v21 }
 0x3e0   : > { %1791 = vmatmul.mubr.msk.bf16.vlgmr.msra.gmra.mxu1 %vm1039_vm5, %v1035_v23  ;;  %1806 = vmatprep.subr.bf16.mxu0 %v1910_v1 }
 0x3e1   : > { %1801 = vmatpush3.bf16.msra.mxu1 %v1137_v25  ;;  %1802 = vmatprep.mubr.msk.bf16.mxu1 %vm1911_vm0, %v1910_v1 }
 0x3e2   : > { %1797 = vmatmul.mubr.msk.bf16.vlgmr.msra.gmra.mxu0 %vm1039_vm5, %v1036_v26  ;;  %1812 = vmatprep.subr.bf16.mxu1 %v1910_v1 }
 0x3e3   : > { %1807 = vmatpush3.bf16.msra.mxu0 %v1183_v27  ;;  %1808 = vmatprep.mubr.msk.bf16.mxu0 %vm1911_vm0, %v1910_v1  ;;  %v1872_v27 = vld [vmem:[%s2250_s5 + $0x8] sm:$0xff]  }
 0x3e4   : > { %1820 = vmatprep.subr.bf16.mxu0 %v1910_v1 }
 0x3f8   : > { %v1026_v28 = vpop.xlane.xlu0 %1025 }
 0x3f9   : > { %1892 = vrcp.f32 %v1026_v28  ;;  %v1874_v28 = vld [vmem:[%s2252_s7 + $0x18] sm:$0xff]  }
 0x3fa   : > { %v1023_v30 = vpop.xlane.xlu1 %1022 }
 0x3fb   : > { %1894 = vrcp.f32 %v1023_v30  ;;  %v1875_v30 = vld [vmem:[%s2252_s7 + $0x10] sm:$0xff]  }
 0x406   : > { %v1893_v31 = vpop.eup %1892 }
 0x407   : > { %v1034_v32 = vmul.f32 %v1893_v31, %v1885_v48 }
 0x408   : > { %v1895_v33 = vpop.eup %1894 }
 0x409   : > { %v1038_v34 = vpack.c.bf16 %v1034_v32, %v1034_v32  ;;  %v1033_v35 = vmul.f32 %v1895_v33, %v2115_v49 }
 0x40b   : > { %1809 = vmatmul.mubr.msk.bf16.vlgmr.msra.gmra.mxu0 %vm1039_vm5, %v1038_v34  ;;  %v1037_v36 = vpack.c.bf16 %v1033_v35, %v1033_v35  ;;  %v1703_v35 = vld [vmem:[%s2254_s9] ss:$0 sm:$0xff] }
 0x40c   : > { %1824 = vmatprep.mubr.msk.bf16.mxu0 %vm1911_vm0, %v1910_v1  ;;  %1821 = vmatpush3.bf16.msra.mxu0 %v1872_v27 }
 0x40d   : > { %1803 = vmatmul.mubr.msk.bf16.vlgmr.msra.gmra.mxu1 %vm1039_vm5, %v1037_v36  ;;  %1822 = vmatprep.subr.bf16.mxu0 %v1910_v1 }
 0x40e   : > { %1816 = vmatprep.mubr.msk.bf16.mxu1 %vm1911_vm0, %v1910_v1  ;;  %1813 = vmatpush3.bf16.msra.mxu1 %v1870_v50 }
 0x40f   : > { %1814 = vmatprep.subr.bf16.mxu1 %v1910_v1 }
 0x412   : > { %1815 = vmatpush3.bf16.msra.mxu1 %v1871_v55 }
 0x413   : > { %1828 = vmatprep.subr.bf16.mxu1 %v1910_v1 }
 0x4a0   : > { %v1081_v37 = vpop.f32.mrf.mxu1 }
 0x4a2   : > { %v1792_v38 = vpop.f32.mrf.mxu1  ;;  %v1127_v39 = vpop.f32.mrf.mxu0 }
 0x4a4   : > { %v1084_v40 = vpop.f32.mrf.mxu1  ;;  %v1798_v41 = vpop.f32.mrf.mxu0 }
 0x4a5   : > { %v1876_v41 = vld [vmem:[%s2252_s7 + $0x8] sm:$0xff]  }
 0x4a6   : > { %v1793_v42 = vpop.f32.mrf.mxu1  ;;  %v1130_v43 = vpop.f32.mrf.mxu0 }
 0x4a7   : > { %v1877_v42 = vld [vmem:[%s2252_s7] sm:$0xff]  }
 0x4a8   : > { %v1799_v7 = vpop.f32.mrf.mxu0  ;;  %v1705_v43 = vld [vmem:[%s2251_s6] ss:$0 sm:$0xff] }
 0x4cb   : > { %v1219_v11 = vpop.f32.mrf.mxu0 }
 0x4cc   : > { %v1233_v44 = vcombine.low %v1127_v39, %v1219_v11 }
 0x4cd   : > { %v1173_v45 = vpop.f32.mrf.mxu1  ;;  %v1810_v46 = vpop.f32.mrf.mxu0 }
 0x4ce   : > { %v1225_v47 = vcombine.low %v1081_v37, %v1173_v45  ;;  %v1240_v51 = vrot.slane %v1233_v44, %v2059_v22  ;;  %v1704_v37 = vld [vmem:[%s2255_s10] ss:$0 sm:$0xff] }
 0x4cf   : > { %v1804_v48 = vpop.f32.mrf.mxu1  ;;  %v1222_v49 = vpop.f32.mrf.mxu0 }
 0x4d0   : > { %v1232_v13 = vrot.slane %v1225_v47, %v2059_v22  ;;  %v1709_v49 = vld [vmem:[%s2253_s8] ss:$0 sm:$0xff] }
 0x4d1   : > { %v1176_v12 = vpop.f32.mrf.mxu1  ;;  %v1811_v52 = vpop.f32.mrf.mxu0 }
 0x4d2   : > { %v1241_v53 = vcombine.low %v1232_v13, %v1240_v51 }
 0x4d3   : > { %v1805_v54 = vpop.f32.mrf.mxu1 }
 0x4d4   : > { %v1248_v56 = vrot.slane %v1241_v53, %v2065_v29 }
 0x4d6   : > { %v1256_v57 = vcombine.high %v1248_v56, %v1910_v1  ;;  %v1255_v58 = vrot.slane %v1248_v56, %v2059_v22 }
 0x4d8   : > { %v1263_v59 = vrot.slane %v1256_v57, %v2059_v22 }
 0x4da   : > { %v1265_v60 = vcombine.high %v1255_v58, %v1263_v59  ;;  %v1264_v61 = vcombine.low %v1255_v58, %v1263_v59 }
 0x4dc   : > { %v1279_v62 = vrot.slane %v1265_v60, %v2065_v29  ;;  %v1272_v63 = vrot.slane %v1264_v61, %v2065_v29 }
 0x4de   : > { %1287 = vrot.lane.b32.xlu1 %v1279_v62, %s1919_s27  ;;  %v1280_v0 = vcombine.high %v1272_v63, %v1910_v1  ;;  %v1281_v2 = vcombine.high %v1279_v62, %v1910_v1 }
 0x4e0   : > { %1283 = vrot.lane.b32.xlu0 %v1280_v0, %s1920_s28  ;;  %v1715_v0 = vld [vmem:[%s2256_s11] ss:$0 sm:$0xff]  ;;  %s489_s28 = scalar_lea.vmem %s2260_s15, %s1685_s24 }
 0x4e2   : > { %1291 = vrot.lane.b32.xlu1 %v1281_v2, %s1921_s29 }
 0x550   : > { %v1288_v4 = vpop.permute.xlu1 %1287 }
 0x552   : > { %v1284_v5 = vpop.permute.xlu0 %1283 }
 0x553   : > { %v1294_v22 = vsel %vm805_vm2, %v1272_v63, %v1284_v5 }
 0x554   : > { %v1292_v6 = vpop.permute.xlu1 %1291  ;;  %v1296_v8 = vsel %vm1295_vm6, %v1294_v22, %v1288_v4  ;;  %v1716_v4 = vld [vmem:[%s2257_s12] ss:$0 sm:$0xff] }
 0x555   : > { %v1298_v9 = vsel %vm1297_vm7, %v1296_v8, %v1292_v6 }
 0x556   : > { %v1299_v29 = vpack.c.bf16 %v1298_v9, %v1298_v9  ;;  %v1878_v9 = vld [vmem:[%s2258_s13 + $0x8] sm:$0xff]  }
 0x558   : > { %1817 = vmatmul.mubr.msk.bf16.vlgmr.msra.gmra.mxu1 %vm544_vm1, %v1299_v29  ;;  %v1879_v29 = vld [vmem:[%s2258_s13] sm:$0xff]  }
 0x559   : > { %1836 = vmatprep.mubr.msk.bf16.mxu1 %vm1911_vm0, %v1910_v1  ;;  %1829 = vmatpush3.bf16.msra.mxu1 %v1874_v28 }
 0x55a   : > { %1830 = vmatprep.subr.bf16.mxu1 %v1910_v1 }
 0x55d   : > { %1831 = vmatpush3.bf16.msra.mxu1 %v1875_v30 }
 0x55e   : > { %1832 = vmatprep.subr.bf16.mxu1 %v1910_v1 }
 0x561   : > { %1833 = vmatpush3.bf16.msra.mxu1 %v1876_v41 }
 0x562   : > { %1834 = vmatprep.subr.bf16.mxu1 %v1910_v1 }
 0x565   : > { %1835 = vmatpush3.bf16.msra.mxu1 %v1877_v42 }
 0x618   : > { %v1355_v14 = vpop.f32.mrf.mxu1 }
 0x619   : > { %v1356_v15 = vadd.f32 %v1699_v10, %v1355_v14 }
 0x61a   : > { %v1818_v16 = vpop.f32.mrf.mxu1 }
 0x61b   : > { %v1361_v17 = vadd.f32 %v1356_v15, %v2032_v3  ;;  %v1873_v3 = vld [vmem:[%s2250_s5] sm:$0xff]  }
 0x61c   : > { %v1358_v18 = vpop.f32.mrf.mxu1  ;;  %1823 = vmatpush3.bf16.msra.mxu0 %v1873_v3 }
 0x61d   : > { %v1363_v19 = vsel %vm1362_vm8, %v1361_v17, 0.0  ;;  %1840 = vmatprep.subr.bf16.mxu0 %v1910_v1  ;;  %v1717_v18 = vld [vmem:[%s2259_s14] ss:$0 sm:$0xff] }
 0x61e   : > { %1364 = vadd.xlane.f32.xlu0 %v1363_v19  ;;  %v1819_v20 = vpop.f32.mrf.mxu1 }
 0x6a7   : > { %v1365_v21 = vpop.xlane.xlu0 %1364 }
 0x6a8   : > { %v1367_v23 = vmul.f32 0.03125, %v1365_v21 }
 0x6aa   : > { %v1368_v24 = vsub.f32 %v1361_v17, %v1367_v23 }
 0x6ac   : > { %v1369_v25 = vmul.f32 %v1368_v24, %v1368_v24 }
 0x6ae   : > { %v1370_v26 = vsel %vm1362_vm8, %v1369_v25, 0.0 }
 0x6af   : > { %1371 = vadd.xlane.f32.xlu1 %v1370_v26 }
 0x738   : > { %v1372_v31 = vpop.xlane.xlu1 %1371 }
 0x739   : > { %v1373_v32 = vmul.f32 0.03125, %v1372_v31 }
 0x73b   : > { %v1374_v33 = vadd.f32 1e-05, %v1373_v32 }
 0x73d   : > { %1896 = vrsqrt.f32 %v1374_v33 }
 0x74a   : > { %v1897_v34 = vpop.eup %1896 }
 0x74b   : > { %v1376_v36 = vmul.f32 %v1897_v34, %v1368_v24 }
 0x74d   : > { %v1383_v38 = vmul.f32 %v1703_v35, %v1376_v36 }
 0x74f   : > { %v1390_v39 = vadd.f32 %v1704_v37, %v1383_v38 }
 0x751   : > { %v1391_v40 = vpack.c.bf16 %v1390_v39, %v1390_v39 }
 0x753   : > { %1825 = vmatmul.mubr.msk.bf16.vlgmr.msra.gmra.mxu0 %vm544_vm1, %v1391_v40 }
 0x754   : > { %1844 = vmatprep.mubr.msk.bf16.mxu0 %vm1911_vm0, %v1910_v1  ;;  %1841 = vmatpush3.bf16.msra.mxu0 %v1878_v9 }
 0x755   : > { %1842 = vmatprep.subr.bf16.mxu0 %v1910_v1 }
 0x758   : > { %1843 = vmatpush3.bf16.msra.mxu0 %v1879_v29 }
 0x813   : > { %v1447_v7 = vpop.f32.mrf.mxu0 }
 0x814   : > { %v1448_v11 = vadd.f32 %v1705_v43, %v1447_v7 }
 0x815   : > { %v1826_v44 = vpop.f32.mrf.mxu0 }
 0x816   : > { %v1453_v45 = vmax.f32 %v1448_v11, 0.0 }
 0x817   : > { %v1450_v46 = vpop.f32.mrf.mxu0 }
 0x818   : > { %v1454_v47 = vpack.c.bf16 %v1453_v45, %v1453_v45 }
 0x819   : > { %v1827_v48 = vpop.f32.mrf.mxu0 }
 0x81a   : > { %1837 = vmatmul.mubr.msk.bf16.vlgmr.msra.gmra.mxu1 %vm1485_vm9, %v1454_v47 }
 0x8da   : > { %v1523_v50 = vpop.f32.mrf.mxu1 }
 0x8db   : > { %v1524_v51 = vadd.f32 %v1709_v49, %v1523_v50 }
 0x8dc   : > { %v1838_v13 = vpop.f32.mrf.mxu1 }
 0x8dd   : > { %v1529_v12 = vadd.f32 %v1524_v51, %v1390_v39 }
 0x8de   : > { %v1526_v52 = vpop.f32.mrf.mxu1 }
 0x8df   : > { %v1530_v53 = vsel %vm1362_vm8, %v1529_v12, 0.0 }
 0x8e0   : > { %1531 = vadd.xlane.f32.xlu0 %v1530_v53  ;;  %v1839_v54 = vpop.f32.mrf.mxu1 }
 0x969   : > { %v1532_v55 = vpop.xlane.xlu0 %1531 }
 0x96a   : > { %v1533_v56 = vmul.f32 0.03125, %v1532_v55 }
 0x96c   : > { %v1534_v57 = vsub.f32 %v1529_v12, %v1533_v56 }
 0x96e   : > { %v1535_v58 = vmul.f32 %v1534_v57, %v1534_v57 }
 0x970   : > { %v1536_v59 = vsel %vm1362_vm8, %v1535_v58, 0.0 }
 0x971   : > { %1537 = vadd.xlane.f32.xlu0 %v1536_v59 }
 0x9fa   : > { %v1538_v60 = vpop.xlane.xlu0 %1537 }
 0x9fb   : > { %v1539_v61 = vmul.f32 0.03125, %v1538_v60 }
 0x9fd   : > { %v1540_v62 = vadd.f32 1e-05, %v1539_v61 }
 0x9ff   : > { %1898 = vrsqrt.f32 %v1540_v62 }
 0xa0c   : > { %v1899_v63 = vpop.eup %1898 }
 0xa0d   : > { %v1542_v2 = vmul.f32 %v1899_v63, %v1534_v57 }
 0xa0f   : > { %v1549_v5 = vmul.f32 %v1715_v0, %v1542_v2 }
 0xa11   : > { %v1556_v22 = vadd.f32 %v1716_v4, %v1549_v5 }
 0xa13   : > { %v1557_v6 = vmul.f32 %v1556_v22, %v1556_v22 }
 0xa15   : > { %v1558_v8 = vsel %vm1362_vm8, %v1557_v6, 0.0 }
 0xa16   : > { %1559 = vadd.xlane.f32.xlu1 %v1558_v8 }
 0xa9f   : > { %v1560_v10 = vpop.xlane.xlu1 %1559 }
 0xaa0   : > { %v1561_v14 = vmax.f32 %v1560_v10, 1e-24 }
 0xaa2   : > { %1900 = vrsqrt.f32 %v1561_v14 }
 0xaaf   : > { %v1901_v15 = vpop.eup %1900 }
 0xab0   : > { %v1563_v16 = vmul.f32 %v1901_v15, %v1556_v22 }
 0xab2   : > { %v1564_v17 = vpack.c.bf16 %v1563_v16, %v1563_v16 }
 0xab4   : > { %1845 = vmatmul.mubr.msk.bf16.vlgmr.msra.gmra.mxu0 %vm544_vm1, %v1564_v17 }
 0xb74   : > { %v1620_v19 = vpop.f32.mrf.mxu0 }
 0xb75   : > { %v1621_v1 = vadd.f32 %v1717_v18, %v1620_v19 }
 0xb76   : > { %v1846_v20 = vpop.f32.mrf.mxu0 }
 0xb77   : > { %1626 = vst [vmem:[%s489_s28] sm:$0x3] %v1621_v1 }
 0xb78   : > { %v1623_v21 = vpop.f32.mrf.mxu0 }
 0xb7a   : > { %v1847_v23 = vpop.f32.mrf.mxu0 }
 0xb7b PF: > { %s25_s18 = sadd.s32 1, %s1908_s18  }
 0xb7c   : > { %p22_p4 = scmp.ge.s32.totalorder %s25_s18, 4  }
 0xb7e   :  { %24 = sbr.rel (!%p22_p4) target bundleno = 1 (0x1), region = 110 }

</bundles_post_ra>
